<compile_context>
chip_gen: v7x
topology: tpu7x:2x2x1
jax: 0.10.0
libtpu: 0.0.40
codegen_flags: <defaults>
</compile_context>

<pallas_src>
import functools

import jax
import jax.numpy as jnp
from jax.experimental import pallas as pl
from jax.experimental.pallas import tpu as pltpu

LANES = 128
SUBLANES = 8
MAX_TILE_M = 4096                      # (4096, 128) f32 = 2 MiB per input block
VMEM_LIMIT_BYTES = 32 * 1024 * 1024    # covers 2 inputs x 2 buffers x 2 MiB + scratch


def _num_tensorcores_per_chip():
    # Only v7x-class chips have 2 TensorCores; on v5e/v6e a second "parallel"
    # segment is just a serial loop with extra overhead.
    try:
        kind = jax.devices()[0].device_kind.lower()
    except Exception:
        return 1
    return 2 if "v7" in kind else 1


def _lyapunov_risk_kernel(v_ref, lv_ref, out_ref, acc_v_ref, acc_l_ref, *,
                          lyapunov_factor, lie_factor, lie_offset,
                          n_rows, tile_m, steps_per_segment):
    p = pl.program_id(0)          # row segment ("parallel" -> per-TensorCore)
    i = pl.program_id(1)          # streaming step within the segment

    @pl.when(i == 0)
    def _init():
        acc_v_ref[...] = jnp.zeros_like(acc_v_ref)
        acc_l_ref[...] = jnp.zeros_like(acc_l_ref)

    tile_idx = p * steps_per_segment + i
    row_start = tile_idx * tile_m
    groups = tile_m // SUBLANES

    def _accumulate(mask=None):
        v = v_ref[...]            # (tile_m, 128) f32
        lv = lv_ref[...]
        cv = jnp.maximum(-v, 0.0)
        cl = jnp.maximum(lv + lie_offset, 0.0)
        if mask is not None:
            # Keep a select (not multiply) so OOB garbage / NaN is neutralized.
            cv = jnp.where(mask, cv, 0.0)
            cl = jnp.where(mask, cl, 0.0)
        if groups > 1:
            cv = cv.reshape(groups, SUBLANES, LANES).sum(axis=0)
            cl = cl.reshape(groups, SUBLANES, LANES).sum(axis=0)
        acc_v_ref[...] += cv
        acc_l_ref[...] += cl

    # Steady state: the whole tile lies inside the slab -> pure stream + add.
    @pl.when(row_start + tile_m <= n_rows)
    def _full_tile():
        _accumulate()

    # Boundary tile: rows >= n_rows hold Pallas OOB-padding garbage -> row mask
    # only (the lane tail inside genuine rows is self-neutralizing padding).
    @pl.when(jnp.logical_and(row_start < n_rows, row_start + tile_m > n_rows))
    def _partial_tile():
        row = jax.lax.broadcasted_iota(jnp.int32, (tile_m, LANES), 0)
        _accumulate(mask=(row + row_start) < n_rows)

    # row_start >= n_rows: clamped duplicate tile -> contributes nothing.

    @pl.when(i == pl.num_programs(1) - 1)
    def _finalize():
        out_ref[0] = (lyapunov_factor * acc_v_ref[...]
                      + lie_factor * acc_l_ref[...])


def lyapunov_risk(V_candidate, L_V, V_X0, *, lyapunov_factor=1.0,
                  lie_factor=1.0, equilibrium_factor=1.0, lie_offset=0.5,
                  max_tile_m=MAX_TILE_M, num_segments=None):
    # TODO(synk): if call sites can supply bf16 inputs, stream them as-is and
    # upcast in-kernel (halves HBM traffic); the module spec implies f32.
    v = jnp.asarray(V_candidate, jnp.float32).reshape(-1)
    lv = jnp.asarray(L_V, jnp.float32).reshape(-1)
    n = v.shape[0]
    assert lv.shape[0] == n and n > 0

    off = float(lie_offset)
    # Pad to an (8,128)-aligned slab with self-neutralizing values:
    # relu(-0) == 0 and relu(-off + off) == 0, so padded elements add 0.
    rem = (-n) % (SUBLANES * LANES)
    if rem:
        v = jnp.pad(v, (0, rem))
        lv = jnp.pad(lv, (0, rem), constant_values=-off)
    v2 = v.reshape(-1, LANES)
    lv2 = lv.reshape(-1, LANES)
    R = v2.shape[0]                               # multiple of 8

    tile_m = max(SUBLANES, (min(int(max_tile_m), R) // SUBLANES) * SUBLANES)
    num_tiles = pl.cdiv(R, tile_m)
    if num_segments is None:
        num_segments = _num_tensorcores_per_chip()
    num_segments = max(1, min(int(num_segments), num_tiles))
    steps = pl.cdiv(num_tiles, num_segments)
    last_tile = num_tiles - 1

    def in_map(p, i):
        # Clamp: a duplicated boundary tile is fully skipped inside the kernel.
        return (jnp.minimum(p * steps + i, last_tile), 0)

    kernel = functools.partial(
        _lyapunov_risk_kernel,
        lyapunov_factor=float(lyapunov_factor),
        lie_factor=float(lie_factor),
        lie_offset=off,
        n_rows=R,
        tile_m=tile_m,
        steps_per_segment=steps,
    )

    partials = pl.pallas_call(
        kernel,
        out_shape=jax.ShapeDtypeStruct((num_segments, SUBLANES, LANES),
                                       jnp.float32),
        grid_spec=pltpu.PrefetchScalarGridSpec(
            num_scalar_prefetch=0,
            grid=(num_segments, steps),
            in_specs=[
                pl.BlockSpec((tile_m, LANES), in_map),     # V_candidate slab
                pl.BlockSpec((tile_m, LANES), in_map),     # L_V slab
            ],
            out_specs=pl.BlockSpec((1, SUBLANES, LANES),
                                   lambda p, i: (p, 0, 0)),
            scratch_shapes=[pltpu.VMEM((SUBLANES, LANES), jnp.float32),
                            pltpu.VMEM((SUBLANES, LANES), jnp.float32)],
        ),
        compiler_params=pltpu.CompilerParams(
            dimension_semantics=("parallel", "arbitrary"),
            vmem_limit_bytes=VMEM_LIMIT_BYTES),
    )(v2, lv2)

    vx0 = jnp.asarray(V_X0, jnp.float32).reshape(())
    return (jnp.sum(partials) / jnp.float32(n)
            + jnp.float32(equilibrium_factor) * vx0 * vx0)


def lyapunov_risk_ref(V_candidate, L_V, V_X0, *, lyapunov_factor=1.0,
                      lie_factor=1.0, equilibrium_factor=1.0, lie_offset=0.5):
    v = jnp.asarray(V_candidate, jnp.float32)
    lv = jnp.asarray(L_V, jnp.float32)
    vx0 = jnp.asarray(V_X0, jnp.float32)
    v_loss = jax.nn.relu(-v)
    lie_loss = jax.nn.relu(lv + lie_offset)
    eq_loss = vx0 ** 2
    return (lyapunov_factor * v_loss + lie_factor * lie_loss).mean() \
        + equilibrium_factor * eq_loss


if __name__ == "__main__":
    key = jax.random.PRNGKey(0)
    k1, k2, k3 = jax.random.split(key, 3)

    # N samples of the candidate Lyapunov function and its Lie derivative,
    # plus the scalar value at the equilibrium state.
    N = 200
    V_candidate = jax.random.normal(k1, (N, 1), dtype=jnp.float32)
    L_V = jax.random.normal(k2, (N, 1), dtype=jnp.float32)
    V_X0 = jax.random.normal(k3, (), dtype=jnp.float32)

    out = jax.block_until_ready(lyapunov_risk(V_candidate, L_V, V_X0))
    ref = jax.block_until_ready(lyapunov_risk_ref(V_candidate, L_V, V_X0))
    assert jnp.allclose(out, ref, rtol=1e-5, atol=1e-5), (out, ref)

    # Multi-tile / multi-segment / duplicate-tile-skip path (tiles divide R).
    N2 = 5000
    k4, k5 = jax.random.split(k3)
    V2 = jax.random.normal(k4, (N2,), dtype=jnp.float32)
    L2 = jax.random.normal(k5, (N2,), dtype=jnp.float32)
    out2 = jax.block_until_ready(
        lyapunov_risk(V2, L2, V_X0, lyapunov_factor=0.7, lie_factor=1.3,
                      equilibrium_factor=2.0, lie_offset=0.5, max_tile_m=8))
    ref2 = jax.block_until_ready(
        lyapunov_risk_ref(V2, L2, V_X0, lyapunov_factor=0.7, lie_factor=1.3,
                          equilibrium_factor=2.0, lie_offset=0.5))
    assert jnp.allclose(out2, ref2, rtol=1e-4, atol=1e-5), (out2, ref2)

    # Partial boundary-tile (row-mask) path: R=40 rows, tile_m=16 -> 40 % 16 != 0.
    out3 = jax.block_until_ready(
        lyapunov_risk(V2, L2, V_X0, lyapunov_factor=0.7, lie_factor=1.3,
                      equilibrium_factor=2.0, lie_offset=0.5, max_tile_m=16))
    assert jnp.allclose(out3, ref2, rtol=1e-4, atol=1e-5), (out3, ref2)

    print("KERNEL_OK")
</pallas_src>

<mosaic_0001>
module attributes {stable_mosaic.version = 11 : i64} {
  func.func @_lyapunov_risk_kernel(%arg0: i32, %arg1: i32, %arg2: memref<8x128xf32, #tpu.memory_space<vmem>>, %arg3: memref<8x128xf32, #tpu.memory_space<vmem>>, %arg4: memref<1x8x128xf32, #tpu.memory_space<vmem>>, %arg5: memref<8x128xf32, #tpu.memory_space<vmem>>, %arg6: memref<8x128xf32, #tpu.memory_space<vmem>>) attributes {dimension_semantics = [#tpu.dimension_semantics<parallel>, #tpu.dimension_semantics<arbitrary>], iteration_bounds = array<i64: 1, 1>, scalar_prefetch = 0 : i64, scratch_operands = 2 : i64, tpu.core_type = #tpu.core_type<tc>, window_params = [{transform_indices = @transform_0, window_bounds = array<i64: 8, 128>}, {transform_indices = @transform_1, window_bounds = array<i64: 8, 128>}, {transform_indices = @transform_2, window_bounds = array<i64: 1, 8, 128>}]} {
    %c0_i32 = arith.constant 0 : i32
    %0 = arith.cmpi eq, %arg1, %c0_i32 : i32
    %1 = arith.extui %0 : i1 to i32
    %c0_i32_0 = arith.constant 0 : i32
    %2 = arith.cmpi ne, %1, %c0_i32_0 : i32
    scf.if %2 {
      %cst = arith.constant 0.000000e+00 : f32
      %19 = vector.broadcast %cst : f32 to vector<8x128xf32>
      %c0 = arith.constant 0 : index
      %c0_10 = arith.constant 0 : index
      %20 = vector.load %arg5[%c0, %c0_10] : memref<8x128xf32, #tpu.memory_space<vmem>>, vector<8x128xf32>
      tpu.vector_store %arg5[%c0, %c0_10], %19 {strides = array<i32>} : memref<8x128xf32, #tpu.memory_space<vmem>>, vector<8x128xf32>,
      %cst_11 = arith.constant 0.000000e+00 : f32
      %21 = vector.broadcast %cst_11 : f32 to vector<8x128xf32>
      %c0_12 = arith.constant 0 : index
      %c0_13 = arith.constant 0 : index
      %22 = vector.load %arg6[%c0_12, %c0_13] : memref<8x128xf32, #tpu.memory_space<vmem>>, vector<8x128xf32>
      tpu.vector_store %arg6[%c0_12, %c0_13], %21 {strides = array<i32>} : memref<8x128xf32, #tpu.memory_space<vmem>>, vector<8x128xf32>,
    } else {
    }
    %c1_i32 = arith.constant 1 : i32
    %3 = arith.muli %arg0, %c1_i32 : i32
    %4 = arith.addi %3, %arg1 : i32
    %c8_i32 = arith.constant 8 : i32
    %5 = arith.muli %4, %c8_i32 : i32
    %c8_i32_1 = arith.constant 8 : i32
    %6 = arith.addi %5, %c8_i32_1 : i32
    %c8_i32_2 = arith.constant 8 : i32
    %7 = arith.cmpi sle, %6, %c8_i32_2 : i32
    %8 = arith.extui %7 : i1 to i32
    %c0_i32_3 = arith.constant 0 : i32
    %9 = arith.cmpi ne, %8, %c0_i32_3 : i32
    scf.if %9 {
      %c0 = arith.constant 0 : index
      %c0_10 = arith.constant 0 : index
      %19 = vector.load %arg2[%c0, %c0_10] : memref<8x128xf32, #tpu.memory_space<vmem>>, vector<8x128xf32>
      %c0_11 = arith.constant 0 : index
      %c0_12 = arith.constant 0 : index
      %20 = vector.load %arg3[%c0_11, %c0_12] : memref<8x128xf32, #tpu.memory_space<vmem>>, vector<8x128xf32>
      %cst = arith.constant 0.000000e+00 : f32
      %21 = vector.broadcast %cst : f32 to vector<8x128xf32>
      %22 = arith.subf %21, %19 : vector<8x128xf32>
      %cst_13 = arith.constant 0.000000e+00 : f32
      %23 = vector.broadcast %cst_13 : f32 to vector<8x128xf32>
      %24 = arith.maximumf %22, %23 : vector<8x128xf32>
      %cst_14 = arith.constant 5.000000e-01 : f32
      %25 = vector.broadcast %cst_14 : f32 to vector<8x128xf32>
      %26 = arith.addf %20, %25 : vector<8x128xf32>
      %cst_15 = arith.constant 0.000000e+00 : f32
      %27 = vector.broadcast %cst_15 : f32 to vector<8x128xf32>
      %28 = arith.maximumf %26, %27 : vector<8x128xf32>
      %c0_16 = arith.constant 0 : index
      %c0_17 = arith.constant 0 : index
      %29 = vector.load %arg5[%c0_16, %c0_17] : memref<8x128xf32, #tpu.memory_space<vmem>>, vector<8x128xf32>
      %30 = arith.addf %29, %24 : vector<8x128xf32>
      %c0_18 = arith.constant 0 : index
      %c0_19 = arith.constant 0 : index
      %31 = vector.load %arg5[%c0_18, %c0_19] : memref<8x128xf32, #tpu.memory_space<vmem>>, vector<8x128xf32>
      tpu.vector_store %arg5[%c0_18, %c0_19], %30 {strides = array<i32>} : memref<8x128xf32, #tpu.memory_space<vmem>>, vector<8x128xf32>,
      %c0_20 = arith.constant 0 : index
      %c0_21 = arith.constant 0 : index
      %32 = vector.load %arg6[%c0_20, %c0_21] : memref<8x128xf32, #tpu.memory_space<vmem>>, vector<8x128xf32>
      %33 = arith.addf %32, %28 : vector<8x128xf32>
      %c0_22 = arith.constant 0 : index
      %c0_23 = arith.constant 0 : index
      %34 = vector.load %arg6[%c0_22, %c0_23] : memref<8x128xf32, #tpu.memory_space<vmem>>, vector<8x128xf32>
      tpu.vector_store %arg6[%c0_22, %c0_23], %33 {strides = array<i32>} : memref<8x128xf32, #tpu.memory_space<vmem>>, vector<8x128xf32>,
    } else {
    }
    %c8_i32_4 = arith.constant 8 : i32
    %10 = arith.cmpi slt, %5, %c8_i32_4 : i32
    %c8_i32_5 = arith.constant 8 : i32
    %11 = arith.addi %5, %c8_i32_5 : i32
    %c8_i32_6 = arith.constant 8 : i32
    %12 = arith.cmpi sgt, %11, %c8_i32_6 : i32
    %13 = arith.andi %10, %12 : i1
    %14 = arith.extui %13 : i1 to i32
    %c0_i32_7 = arith.constant 0 : i32
    %15 = arith.cmpi ne, %14, %c0_i32_7 : i32
    scf.if %15 {
      %19 = tpu.iota {dimensions = array<i32: 0>} : vector<8x128xi32>
      %20 = vector.broadcast %5 : i32 to vector<8x128xi32>
      %21 = arith.addi %19, %20 : vector<8x128xi32>
      %c8_i32_10 = arith.constant 8 : i32
      %22 = vector.broadcast %c8_i32_10 : i32 to vector<8x128xi32>
      %23 = arith.cmpi slt, %21, %22 : vector<8x128xi32>
      %c0 = arith.constant 0 : index
      %c0_11 = arith.constant 0 : index
      %24 = vector.load %arg2[%c0, %c0_11] : memref<8x128xf32, #tpu.memory_space<vmem>>, vector<8x128xf32>
      %c0_12 = arith.constant 0 : index
      %c0_13 = arith.constant 0 : index
      %25 = vector.load %arg3[%c0_12, %c0_13] : memref<8x128xf32, #tpu.memory_space<vmem>>, vector<8x128xf32>
      %cst = arith.constant 0.000000e+00 : f32
      %26 = vector.broadcast %cst : f32 to vector<8x128xf32>
      %27 = arith.subf %26, %24 : vector<8x128xf32>
      %cst_14 = arith.constant 0.000000e+00 : f32
      %28 = vector.broadcast %cst_14 : f32 to vector<8x128xf32>
      %29 = arith.maximumf %27, %28 : vector<8x128xf32>
      %cst_15 = arith.constant 5.000000e-01 : f32
      %30 = vector.broadcast %cst_15 : f32 to vector<8x128xf32>
      %31 = arith.addf %25, %30 : vector<8x128xf32>
      %cst_16 = arith.constant 0.000000e+00 : f32
      %32 = vector.broadcast %cst_16 : f32 to vector<8x128xf32>
      %33 = arith.maximumf %31, %32 : vector<8x128xf32>
      %cst_17 = arith.constant 0.000000e+00 : f32
      %34 = vector.broadcast %cst_17 : f32 to vector<8x128xf32>
      %35 = arith.select %23, %29, %34 : vector<8x128xi1>, vector<8x128xf32>
      %cst_18 = arith.constant 0.000000e+00 : f32
      %36 = vector.broadcast %cst_18 : f32 to vector<8x128xf32>
      %37 = arith.select %23, %33, %36 : vector<8x128xi1>, vector<8x128xf32>
      %c0_19 = arith.constant 0 : index
      %c0_20 = arith.constant 0 : index
      %38 = vector.load %arg5[%c0_19, %c0_20] : memref<8x128xf32, #tpu.memory_space<vmem>>, vector<8x128xf32>
      %39 = arith.addf %38, %35 : vector<8x128xf32>
      %c0_21 = arith.constant 0 : index
      %c0_22 = arith.constant 0 : index
      %40 = vector.load %arg5[%c0_21, %c0_22] : memref<8x128xf32, #tpu.memory_space<vmem>>, vector<8x128xf32>
      tpu.vector_store %arg5[%c0_21, %c0_22], %39 {strides = array<i32>} : memref<8x128xf32, #tpu.memory_space<vmem>>, vector<8x128xf32>,
      %c0_23 = arith.constant 0 : index
      %c0_24 = arith.constant 0 : index
      %41 = vector.load %arg6[%c0_23, %c0_24] : memref<8x128xf32, #tpu.memory_space<vmem>>, vector<8x128xf32>
      %42 = arith.addf %41, %37 : vector<8x128xf32>
      %c0_25 = arith.constant 0 : index
      %c0_26 = arith.constant 0 : index
      %43 = vector.load %arg6[%c0_25, %c0_26] : memref<8x128xf32, #tpu.memory_space<vmem>>, vector<8x128xf32>
      tpu.vector_store %arg6[%c0_25, %c0_26], %42 {strides = array<i32>} : memref<8x128xf32, #tpu.memory_space<vmem>>, vector<8x128xf32>,
    } else {
    }
    %c0_i32_8 = arith.constant 0 : i32
    %16 = arith.cmpi eq, %arg1, %c0_i32_8 : i32
    %17 = arith.extui %16 : i1 to i32
    %c0_i32_9 = arith.constant 0 : i32
    %18 = arith.cmpi ne, %17, %c0_i32_9 : i32
    scf.if %18 {
      %c0 = arith.constant 0 : index
      %c0_10 = arith.constant 0 : index
      %19 = vector.load %arg5[%c0, %c0_10] : memref<8x128xf32, #tpu.memory_space<vmem>>, vector<8x128xf32>
      %cst = arith.constant 1.000000e+00 : f32
      %20 = vector.broadcast %cst : f32 to vector<8x128xf32>
      %21 = arith.mulf %20, %19 : vector<8x128xf32>
      %c0_11 = arith.constant 0 : index
      %c0_12 = arith.constant 0 : index
      %22 = vector.load %arg6[%c0_11, %c0_12] : memref<8x128xf32, #tpu.memory_space<vmem>>, vector<8x128xf32>
      %cst_13 = arith.constant 1.000000e+00 : f32
      %23 = vector.broadcast %cst_13 : f32 to vector<8x128xf32>
      %24 = arith.mulf %23, %22 : vector<8x128xf32>
      %25 = arith.addf %21, %24 : vector<8x128xf32>
      %c0_14 = arith.constant 0 : index
      %c0_15 = arith.constant 0 : index
      %c0_16 = arith.constant 0 : index
      %26 = vector.load %arg4[%c0_14, %c0_15, %c0_16] : memref<1x8x128xf32, #tpu.memory_space<vmem>>, vector<1x8x128xf32>
      %27 = vector.shape_cast %26 : vector<1x8x128xf32> to vector<8x128xf32>
      %28 = vector.shape_cast %25 : vector<8x128xf32> to vector<1x8x128xf32>
      tpu.vector_store %arg4[%c0_14, %c0_15, %c0_16], %28 {strides = array<i32>} : memref<1x8x128xf32, #tpu.memory_space<vmem>>, vector<1x8x128xf32>,
    } else {
    }
    return
  }
  func.func @transform_0(%arg0: i32, %arg1: i32) -> (i32, i32) {
    %c1_i32 = arith.constant 1 : i32
    %0 = arith.muli %arg0, %c1_i32 : i32
    %1 = arith.addi %0, %arg1 : i32
    %c0_i32 = arith.constant 0 : i32
    %2 = arith.minsi %1, %c0_i32 : i32
    %c0_i32_0 = arith.constant 0 : i32
    %c0_i32_1 = arith.constant 0 : i32
    return %2, %c0_i32_0 : i32, i32
  }
  func.func @transform_1(%arg0: i32, %arg1: i32) -> (i32, i32) {
    %c1_i32 = arith.constant 1 : i32
    %0 = arith.muli %arg0, %c1_i32 : i32
    %1 = arith.addi %0, %arg1 : i32
    %c0_i32 = arith.constant 0 : i32
    %2 = arith.minsi %1, %c0_i32 : i32
    %c0_i32_0 = arith.constant 0 : i32
    %c0_i32_1 = arith.constant 0 : i32
    return %2, %c0_i32_0 : i32, i32
  }
  func.func @transform_2(%arg0: i32, %arg1: i32) -> (i32, i32, i32) {
    %c0_i32 = arith.constant 0 : i32
    %c0_i32_0 = arith.constant 0 : i32
    %c0_i32_1 = arith.constant 0 : i32
    return %arg0, %c0_i32, %c0_i32_0 : i32, i32, i32
  }
}

</mosaic_0001>

<bundles_post_ra>
// kernel: tpu_custom_call.1
= control target key start
LH: loop header
LB: loop body
LE: loop exit
PB: predicated region body
PF: predicated region fallthrough
CT: control target
= control target key end

     0   :  { %7 = vsyncpa [#allocation5], 0  ;;  %s258_s0 = inlined_call_operand.hbm [shape: f32[8,128], index: 0, kind: input, shape index: {}]   ;;  %s259_s1 = inlined_call_operand.hbm [shape: f32[8,128], index: 1, kind: input, shape index: {}]   ;;  %s260_s2 = inlined_call_operand.hbm [shape: f32[1,8,128], index: 2, kind: output, shape index: {}]  }
   0x1   :  { %8 = vsyncpa [#allocation8], 0 }
   0x2   :  { %9 = vsyncpa [#allocation6], 0  ;;  %s204_s9 = smov [#allocation4]   ;;  %s205_s11 = smov [#allocation7]  }
   0x3   :  { %s21_s10 = sshll.u32 %s204_s9, 4  ;;  %s36_s12 = sshll.u32 %s205_s11, 4  ;;  %s22_s10 = int_to_ptr.vmem [resolvable:$true] %s21_s10  ;;  %s37_s12 = int_to_ptr.vmem [resolvable:$true] %s36_s12 }
   0x4   :  { %s132_s15 = scalar_lea.hbm %s258_s0, 128 }
   0x5   :  { %p133_p0 = scmp.ne.s32.totalorder %s258_s0, %s132_s15  ;;  %p136_p1 = scmp.lt.u32.totalorder %s132_s15, %s258_s0 }
   0x7   :  { %p138_p2 = pnand %p136_p1, %p133_p0 }
   0x9   :  { %141 = shalt.err (!%p138_p2)
}
   0xa   :  { %s142_s20 = scalar_lea.vmem %s22_s10, 128  ;;  %p147_p4 = scmp.lt.s32.totalorder %s22_s10, %s22_s10 }
   0xb   :  { %p143_p3 = scmp.ne.s32.totalorder %s22_s10, %s142_s20  ;;  %p148_p5 = scmp.lt.s32.totalorder %s142_s20, %s142_s20 }
   0xd   :  { %p149_p6 = por %p148_p5, %p147_p4 }
   0xf   :  { %p150_p7 = pnand %p149_p6, %p143_p3 }
  0x11   :  { %153 = shalt.err (!%p150_p7)
}
  0x12   :  { %24 = dma.hbm_to_vmem [thread:$0]  %s258_s0, 128, %s22_s10, [#allocation5]  }
  0x13   :  { %s154_s25 = scalar_lea.hbm %s259_s1, 128 }
  0x14   :  { %p155_p8 = scmp.ne.s32.totalorder %s259_s1, %s154_s25  ;;  %p158_p9 = scmp.lt.u32.totalorder %s154_s25, %s259_s1 }
  0x16   :  { %p160_p10 = pnand %p158_p9, %p155_p8 }
  0x18   :  { %163 = shalt.err (!%p160_p10)
}
  0x19   :  { %s164_s30 = scalar_lea.vmem %s37_s12, 128  ;;  %p169_p12 = scmp.lt.s32.totalorder %s37_s12, %s37_s12 }
  0x1a   :  { %p165_p11 = scmp.ne.s32.totalorder %s37_s12, %s164_s30  ;;  %p170_p13 = scmp.lt.s32.totalorder %s164_s30, %s164_s30 }
  0x1c   :  { %p171_p0 = por %p170_p13, %p169_p12 }
  0x1e   :  { %p172_p1 = pnand %p171_p0, %p165_p11 }
  0x20   :  { %175 = shalt.err (!%p172_p1)
}
  0x21   :  { %39 = dma.hbm_to_vmem [thread:$0]  %s259_s1, 128, %s37_s12, [#allocation8]  }
  0x22   :  { %198 = dma.done.wait [#allocation5], 128  }
  0x23   :  { %199 = vsyncadd [#allocation5], 4294967168 }
  0x24   :  { %200 = dma.done.wait [#allocation8], 128  }
  0x25   :  { %201 = vsyncadd [#allocation8], 4294967168  ;;  %v65_v0 = vld [vmem:[#allocation4] sm:$0xff]  ;;  %v66_v1 = vld [vmem:[#allocation7] sm:$0xff]  ;;  %s206_s4 = smov [#allocation9]  }
  0x26   :  { %v67_v2 = vsub.f32 0.0, %v65_v0  ;;  %v69_v3 = vadd.f32 0.5, %v66_v1  ;;  %s115_s5 = sshll.u32 %s206_s4, 4  ;;  %s116_s5 = int_to_ptr.vmem [resolvable:$true] %s115_s5 }
  0x27   :  { %s176_s6 = scalar_lea.vmem %s116_s5, 128  ;;  %p181_p3 = scmp.lt.s32.totalorder %s116_s5, %s116_s5 }
  0x28   :  { %v68_v4 = vmax.f32 %v67_v2, 0.0  ;;  %v70_v5 = vmax.f32 %v69_v3, 0.0  ;;  %p177_p2 = scmp.ne.s32.totalorder %s116_s5, %s176_s6  ;;  %p182_p4 = scmp.lt.s32.totalorder %s176_s6, %s176_s6 }
  0x2a   :  { %v107_v6 = vadd.f32 %v70_v5, %v68_v4  ;;  %p183_p5 = por %p182_p4, %p181_p3 }
  0x2c   :  { %108 = vst [vmem:[#allocation9] sm:$0xff] %v107_v6  ;;  %p184_p6 = pnand %p183_p5, %p177_p2 }
  0x2e   :  { %187 = shalt.err (!%p184_p6)
}
  0x2f   :  { %s188_s8 = scalar_lea.hbm %s260_s2, 128 }
  0x30   :  { %p189_p7 = scmp.ne.s32.totalorder %s260_s2, %s188_s8  ;;  %p192_p8 = scmp.lt.u32.totalorder %s188_s8, %s260_s2 }
  0x32   :  { %p194_p9 = pnand %p192_p8, %p189_p7 }
  0x34   :  { %197 = shalt.err (!%p194_p9)
}
  0x35   :  { %118 = dma.vmem_to_hbm [thread:$0]  %s116_s5, 128, %s260_s2, [#allocation6]  }
  0x36   :  { %202 = dma.done.wait [#allocation6], 128  }
  0x37   :  { %203 = vsyncadd [#allocation6], 4294967168 }
  0x38   :  { %122 = vsyncpa [#allocation5], 1 }
  0x39   :  { %123 = vsyncpa [#allocation8], 1 }
  0x3a   :  { %124 = vsyncpa [#allocation6], 1 }

</bundles_post_ra>
